<compile_context>
chip_gen: v7x
topology: tpu7x:2x2x1
jax: 0.10.0
libtpu: 0.0.40
codegen_flags: <defaults>
</compile_context>

<pallas_src>
import functools

import jax
import jax.numpy as jnp
from jax.experimental import pallas as pl
from jax.experimental.pallas import tpu as pltpu


def _round_up(x, m):
    return (x + m - 1) // m * m


# ----------------------------------------------------------------------------
# Pallas kernel: fused MLP forward for one batch tile (batch on the lane axis).
# ----------------------------------------------------------------------------
def _mlp_critic_kernel(*refs, activs):
    # refs = (x_ref, w0, b0, w1, b1, ..., w_last, b_last, out_ref)
    x_ref = refs[0]
    out_ref = refs[-1]
    params = refs[1:-1]
    n_linear = len(params) // 2          # hidden layers + final linear layer

    # One transpose per tile: (TB, S) -> (S, TB).  From here on every
    # activation is (width, TB): lanes fully utilized by the batch dimension.
    # bf16 x is upcast in VMEM (its HBM read was already half-width).
    h = x_ref[...].astype(jnp.float32).T                     # (S, TB)

    for i in range(n_linear - 1):
        w = params[2 * i][...]           # (out_i, in_i)  f32, torch layout
        b = params[2 * i + 1][...]       # (out_i, 1)     f32
        h = jnp.dot(w, h, preferred_element_type=jnp.float32) + b
        if activs[i] == "relu":
            h = jnp.maximum(h, 0.0)
        else:                            # "tanh"
            h = jnp.tanh(h)

    # Final layer (hidden -> 1): (1, hidden) @ (hidden, TB) -> (1, TB),
    # written directly as the lane-dense output block.
    wl = params[-2][...]                 # (1, hidden_last) f32
    bl = params[-1][...]                 # (1, 1)           f32
    out_ref[...] = (jnp.dot(wl, h, preferred_element_type=jnp.float32)
                    + bl).astype(out_ref.dtype)


# ----------------------------------------------------------------------------
# Wrapper
# ----------------------------------------------------------------------------
def mlp_critic_forward(x, weights, biases, activs, *, block_batch=4096):
    """Fused MLPCritic forward.

    x:        (batch, state_size), float32 or bfloat16.
    weights:  torch (out_i, in_i) layout, float32 (matches nn.Linear numerics).
    biases:   (out_i, 1) float32 each; final bias is (1, 1).
    activs:   activation names for the hidden layers ("relu"/"tanh").
    returns:  (batch, 1) float32.
    """
    batch, state_size = x.shape
    assert block_batch % 128 == 0, "block_batch must be a multiple of 128"

    if batch <= 256:
        # Small problem: a single full-array tile (exempt from 8/128 rules).
        tb, grid = batch, 1
    else:
        # At least two tiles (dual-TC on v7x via "parallel"); each tile is a
        # multiple of 128 (sublane rule for x, lane-dense out blocks) and is
        # capped by block_batch (VMEM budget).  No padding: the last tile may
        # be partial; OOB output lanes are masked, OOB input rows are garbage
        # that never leaves its own lane and is never returned.
        tb = min(block_batch, _round_up(pl.cdiv(batch, 2), 128))
        grid = pl.cdiv(batch, tb)

    operands = [x]
    # x tile marches over the batch; each grid step gets a fresh (tb, S) block.
    in_specs = [pl.BlockSpec((tb, state_size), lambda i: (i, 0))]
    for w, b in zip(weights, biases):
        operands += [w, b]
        # Parameters: full-array blocks with constant block indices -> DMA'd
        # once and VMEM-resident across all grid steps.  (They are a few KiB,
        # so the default double-buffer is free; pl.Buffered(1) intentionally
        # omitted to stay on the plain lowering path.)
        in_specs += [pl.BlockSpec(w.shape, lambda i: (0, 0)),
                     pl.BlockSpec(b.shape, lambda i: (0, 0))]

    # Lane-dense output: one row, batch on the lane axis, tiled in (1, tb)
    # blocks.  Reshaped to (batch, 1) in the wrapper.
    out_shape = jax.ShapeDtypeStruct((1, batch), jnp.float32)
    out_spec = pl.BlockSpec((1, tb), lambda i: (0, i))

    # VMEM budget estimate: double-buffered x/out tiles + resident params +
    # live (width, TB) f32 intermediates.  Only raise the scoped-VMEM limit
    # when it would stress v5e's 16 MiB default; cap under v7x's 64 MiB.
    widths = [state_size] + [int(w.shape[0]) for w in weights]
    vmem_est = (2 * tb * state_size * x.dtype.itemsize            # x (dbl-buf)
                + 2 * tb * 4                                      # out (dbl-buf)
                + sum(int(w.size) * w.dtype.itemsize for w in weights)
                + sum(int(b.size) * b.dtype.itemsize for b in biases)
                + 2 * max(widths) * tb * 4)                       # intermediates
    cp_kwargs = dict(dimension_semantics=("parallel",))
    if vmem_est > (12 << 20):
        cp_kwargs["vmem_limit_bytes"] = int(min(2 * vmem_est, 48 << 20))

    kernel = functools.partial(_mlp_critic_kernel, activs=tuple(activs))

    out = pl.pallas_call(
        kernel,
        grid=(grid,),
        in_specs=in_specs,
        out_specs=out_spec,
        out_shape=out_shape,
        compiler_params=pltpu.CompilerParams(**cp_kwargs),
    )(*operands)

    return out.reshape(batch, 1)


# ----------------------------------------------------------------------------
# Deterministic parameter construction (mirrors MLPCritic.__init__)
# ----------------------------------------------------------------------------
def _orthogonal(key, rows, cols):
    """nn.init.orthogonal_-style init: QR of a (rows, cols) gaussian
    (transposed when rows < cols, like torch)."""
    transpose = rows < cols
    r_, c_ = (cols, rows) if transpose else (rows, cols)
    a = jax.random.normal(key, (r_, c_), dtype=jnp.float32)
    q, r = jnp.linalg.qr(a)
    q = q * jnp.sign(jnp.diagonal(r))[None, :]
    if transpose:
        q = q.T
    return q                                                     # (rows, cols)


def make_mlp_critic_params(key, state_size, hidden_size):
    layer_sizes = [state_size, *hidden_size["layer"], 1]
    activ_funcs = hidden_size["activ"].split(",")
    if len(activ_funcs) == 1:
        activ_funcs = activ_funcs * len(hidden_size["layer"])
    assert len(activ_funcs) == len(layer_sizes) - 2

    weights, biases = [], []
    for i in range(len(layer_sizes) - 1):
        key, sub = jax.random.split(key)
        fan_in, fan_out = layer_sizes[i], layer_sizes[i + 1]
        # Torch (out, in) layout, float32 (matches nn.Linear numerics).
        weights.append(_orthogonal(sub, fan_out, fan_in))
        biases.append(jnp.full((fan_out, 1), 0.1, jnp.float32))
    return weights, biases, activ_funcs


# Pure-JAX f32 reference (PyTorch semantics).
def _ref_forward(x, weights, biases, activs):
    hp = jax.lax.Precision.HIGHEST
    h = x.astype(jnp.float32)
    for i in range(len(weights) - 1):
        h = jnp.dot(h, weights[i].T, precision=hp) + biases[i][:, 0]
        h = jnp.maximum(h, 0.0) if activs[i] == "relu" else jnp.tanh(h)
    return jnp.dot(h, weights[-1].T, precision=hp) + biases[-1][:, 0]  # (B, 1)


if __name__ == "__main__":
    key = jax.random.PRNGKey(0)
    state_size = 32

    def check(x, weights, biases, activs, block_batch=4096, tol=1e-3):
        out = jax.block_until_ready(
            mlp_critic_forward(x, weights, biases, activs,
                               block_batch=block_batch))
        ref = _ref_forward(x, weights, biases, activs)
        assert out.shape == (x.shape[0], 1), out.shape
        err = float(jnp.max(jnp.abs(out - ref)))
        assert jnp.allclose(out, ref, atol=tol, rtol=tol), f"max abs err {err}"

    # Config 1: module default (32 -> 16 tanh -> 1).
    hidden_size = {"layer": [16], "activ": "tanh"}
    key, pkey = jax.random.split(key)
    w1, b1, a1 = make_mlp_critic_params(pkey, state_size, hidden_size)

    key, xkey = jax.random.split(key)
    x_big = jax.random.normal(xkey, (1024, state_size), dtype=jnp.float32)
    check(x_big, w1, b1, a1)                       # 2 tiles of 512 -> both TCs on v7x

    # bf16 x as if produced upstream: halves the only large HBM read.
    check(x_big.astype(jnp.bfloat16), w1, b1, a1)

    key, xkey = jax.random.split(key)
    x_small = jax.random.normal(xkey, (6, state_size), dtype=jnp.float32)
    check(x_small, w1, b1, a1)                     # single full-array tile path

    key, xkey = jax.random.split(key)
    x_rag = jax.random.normal(xkey, (700, state_size), dtype=jnp.float32)
    check(x_rag, w1, b1, a1)                       # ragged: partial last block, no pad

    # Config 2: multi hidden layer / relu (32 -> 64 relu -> 32 tanh -> 1).
    hidden_size2 = {"layer": [64, 32], "activ": "relu,tanh"}
    key, pkey2 = jax.random.split(key)
    w2, b2, a2 = make_mlp_critic_params(pkey2, state_size, hidden_size2)
    key, xkey = jax.random.split(key)
    x_relu = jax.random.normal(xkey, (512, state_size), dtype=jnp.float32)
    check(x_relu, w2, b2, a2)

    print("KERNEL_OK")
</pallas_src>

<mosaic_0001>
module attributes {stable_mosaic.version = 11 : i64} {
  func.func @_mlp_critic_kernel(%arg0: i32, %arg1: memref<512x32xf32, #tpu.memory_space<vmem>>, %arg2: memref<16x32xf32, #tpu.memory_space<vmem>>, %arg3: memref<16x1xf32, #tpu.memory_space<vmem>>, %arg4: memref<1x16xf32, #tpu.memory_space<vmem>>, %arg5: memref<1x1xf32, #tpu.memory_space<vmem>>, %arg6: memref<1x512xf32, #tpu.memory_space<vmem>>) attributes {dimension_semantics = [#tpu.dimension_semantics<parallel>], iteration_bounds = array<i64: 2>, scalar_prefetch = 0 : i64, scratch_operands = 0 : i64, tpu.core_type = #tpu.core_type<tc>, window_params = [{transform_indices = @transform_0, window_bounds = array<i64: 512, 32>}, {pipeline_mode = #tpu.pipeline_mode<synchronous>, transform_indices = @transform_1, window_bounds = array<i64: 16, 32>}, {pipeline_mode = #tpu.pipeline_mode<synchronous>, transform_indices = @transform_2, window_bounds = array<i64: 16, 1>}, {pipeline_mode = #tpu.pipeline_mode<synchronous>, transform_indices = @transform_3, window_bounds = array<i64: 1, 16>}, {pipeline_mode = #tpu.pipeline_mode<synchronous>, transform_indices = @transform_4, window_bounds = array<i64: 1, 1>}, {transform_indices = @transform_5, window_bounds = array<i64: 1, 512>}]} {
    %c0 = arith.constant 0 : index
    %c0_0 = arith.constant 0 : index
    %0 = vector.load %arg1[%c0, %c0_0] : memref<512x32xf32, #tpu.memory_space<vmem>>, vector<512x32xf32>
    %1 = tpu.transpose %0, [1, 0] : vector<512x32xf32> -> vector<32x512xf32>
    %c0_1 = arith.constant 0 : index
    %c0_2 = arith.constant 0 : index
    %2 = vector.load %arg2[%c0_1, %c0_2] : memref<16x32xf32, #tpu.memory_space<vmem>>, vector<16x32xf32>
    %c0_3 = arith.constant 0 : index
    %c0_4 = arith.constant 0 : index
    %3 = vector.load %arg3[%c0_3, %c0_4] : memref<16x1xf32, #tpu.memory_space<vmem>>, vector<16x1xf32>
    %cst = arith.constant dense<0.000000e+00> : vector<16x512xf32>
    %4 = tpu.matmul %2, %1, %cst {dimension_numbers = #tpu.dot_dimension_numbers<[1], [0], [0], [1], [0, 0, 1, 1], [], []>} : vector<16x32xf32>, vector<32x512xf32>, vector<16x512xf32> -> vector<16x512xf32>
    %5 = vector.broadcast %3 : vector<16x1xf32> to vector<16x512xf32>
    %6 = arith.addf %4, %5 : vector<16x512xf32>
    %7 = math.tanh %6 : vector<16x512xf32>
    %c0_5 = arith.constant 0 : index
    %c0_6 = arith.constant 0 : index
    %8 = vector.load %arg4[%c0_5, %c0_6] : memref<1x16xf32, #tpu.memory_space<vmem>>, vector<1x16xf32>
    %c0_7 = arith.constant 0 : index
    %c0_8 = arith.constant 0 : index
    %9 = vector.load %arg5[%c0_7, %c0_8] : memref<1x1xf32, #tpu.memory_space<vmem>>, vector<1x1xf32>
    %cst_9 = arith.constant dense<0.000000e+00> : vector<1x512xf32>
    %10 = tpu.matmul %8, %7, %cst_9 {dimension_numbers = #tpu.dot_dimension_numbers<[1], [0], [0], [1], [0, 0, 1, 1], [], []>} : vector<1x16xf32>, vector<16x512xf32>, vector<1x512xf32> -> vector<1x512xf32>
    %11 = vector.broadcast %9 : vector<1x1xf32> to vector<1x512xf32>
    %12 = arith.addf %10, %11 : vector<1x512xf32>
    %c0_10 = arith.constant 0 : index
    %c0_11 = arith.constant 0 : index
    %13 = vector.load %arg6[%c0_10, %c0_11] : memref<1x512xf32, #tpu.memory_space<vmem>>, vector<1x512xf32>
    tpu.vector_store %arg6[%c0_10, %c0_11], %12 {strides = array<i32>} : memref<1x512xf32, #tpu.memory_space<vmem>>, vector<1x512xf32>,
    return
  }
  func.func @transform_0(%arg0: i32) -> (i32, i32) {
    %c0_i32 = arith.constant 0 : i32
    %c0_i32_0 = arith.constant 0 : i32
    return %arg0, %c0_i32 : i32, i32
  }
  func.func @transform_1(%arg0: i32) -> (i32, i32) {
    %c0_i32 = arith.constant 0 : i32
    %c0_i32_0 = arith.constant 0 : i32
    %c0_i32_1 = arith.constant 0 : i32
    return %c0_i32, %c0_i32_0 : i32, i32
  }
  func.func @transform_2(%arg0: i32) -> (i32, i32) {
    %c0_i32 = arith.constant 0 : i32
    %c0_i32_0 = arith.constant 0 : i32
    %c0_i32_1 = arith.constant 0 : i32
    return %c0_i32, %c0_i32_0 : i32, i32
  }
  func.func @transform_3(%arg0: i32) -> (i32, i32) {
    %c0_i32 = arith.constant 0 : i32
    %c0_i32_0 = arith.constant 0 : i32
    %c0_i32_1 = arith.constant 0 : i32
    return %c0_i32, %c0_i32_0 : i32, i32
  }
  func.func @transform_4(%arg0: i32) -> (i32, i32) {
    %c0_i32 = arith.constant 0 : i32
    %c0_i32_0 = arith.constant 0 : i32
    %c0_i32_1 = arith.constant 0 : i32
    return %c0_i32, %c0_i32_0 : i32, i32
  }
  func.func @transform_5(%arg0: i32) -> (i32, i32) {
    %c0_i32 = arith.constant 0 : i32
    %c0_i32_0 = arith.constant 0 : i32
    return %c0_i32, %arg0 : i32, i32
  }
}

</mosaic_0001>

<bundles_post_ra>
// kernel: tpu_custom_call.1
= control target key start
LH: loop header
LB: loop body
LE: loop exit
PB: predicated region body
PF: predicated region fallthrough
CT: control target
= control target key end

     0   :  { %s1616_s0 = inlined_call_operand.vmem [shape: f32[1024,32], index: 0, kind: input, shape index: {}]   ;;  %s1617_s1 = inlined_call_operand.vmem [shape: f32[16,32], index: 1, kind: input, shape index: {}]   ;;  %s1618_s2 = inlined_call_operand.vmem [shape: f32[16,1], index: 2, kind: input, shape index: {}]   ;;  %s1619_s3 = inlined_call_operand.vmem [shape: f32[1,16], index: 3, kind: input, shape index: {}]   ;;  %s1620_s4 = inlined_call_operand.<no memory space> [shape: f32[1,1], index: 4, kind: input, shape index: {}]   ;;  %s1621_s5 = inlined_call_operand.hbm [shape: f32[1,1024], index: 5, kind: output, shape index: {}]  }
   0x1   :  { %v10_v0 = vstv %s1620_s4 }
   0x2   :  { %11 = vst [vmem:[#allocation2] sm:$0x1] %v10_v0 }
   0x3   :  { %12 = vsyncpa [#allocation4], 0 }
   0x4   :  { %14 = vsyncpa [#allocation4 + $0x1], 0  ;;  %s1352_s20 = smov 0   ;;  %s1354_s21 = smov 0  }
   0x5   :  { %s1356_s22 = smov 0   ;;  %s1358_s23 = smov 0  }
   0x6 LB: > { %s931_s4 = sadd.s32 4294967295, %s1313_s23   ;;  %s932_s24 = sadd.s32 4294967294, %s1313_s23   ;;  %s1313_s23 = sphi %s1358_s23, %s1629_s23   ;;  %s1309_s22 = sphi %s1356_s22, %s1628_s22   ;;  %s1305_s21 = sphi %s1354_s21, %s1627_s21   ;;  %s1301_s20 = sphi %s1352_s20, %s1626_s20  }
   0x7   : > { %s1375_s25 = sadd.s32 1, %s1313_s23   ;;  %s137_s26 = sadd.s32 1, %s1309_s22 }
   0x8   : > { %s134_s27 = ssub.s32 %s1313_s23, %s1375_s25  ;;  %p147_p0 = scmp.ne.s32.totalorder %s1309_s22, %s1305_s21 }
   0x9   : > { %p135_p1 = scmp.eq.s32.totalorder %s134_s27, 0  ;;  %p148_p2 = scmp.eq.s32.totalorder %s931_s4, 1 }
   0xa   : > { %p153_p3 = scmp.ne.s32.totalorder %s1305_s21, %s1301_s20  ;;  %p154_p4 = scmp.eq.s32.totalorder %s932_s24, 1 }
   0xb   : > { %s1385_s28 = scalar_select %p135_p1, %s1309_s22, %s137_s26  }
   0xc   : > { %p1387_p5 = por %p148_p2, %p147_p0  ;;  %p1391_p6 = por %p154_p4, %p153_p3 }
   0xd   : > { %p935_p7 = scmp.ge.s32.totalorder %s1313_s23, 1  ;;  %p193_p8 = scmp.lt.s32.totalorder %s1313_s23, 3 }
   0xf   : > { %p194_p9 = pnand %p935_p7, %p193_p8 }
  0x10   : > { %s1397_s6 = sshll.u32 (!%p194_p9), %s931_s4, 6  ;;  %vm306_vm0 = vcmask (!%p194_p9), 261120   ;;  %v1402_v1 = vld [vmem:[%s1617_s1] sm:$0xff] (!%p194_p9)  ;;  %v1315_v3 = vmov (!%p194_p9), 0   ;;  %v295_v4 = vld [vmem:[%s1618_s2 + $0x8] sm:$0xff] (!%p194_p9)  ;;  %v1316_v5 = vmov (!%p194_p9), 0.0  }
  0x11   : > { %197 = sbr.rel (%p194_p9) target bundleno = 571 (0x23b), region = 40  ;;  %v294_v2 = vld [vmem:[%s1618_s2] sm:$0xff] (!%p194_p9)  ;;  %p222_p10 = scmp.lt.s32.totalorder (!%p194_p9), %s1397_s6, 127  ;;  %1047 = vmatprep.mubr.msk.f32.mxu0 (!%p194_p9), %vm306_vm0, %v1402_v1  ;;  %1083 = vmatprep.mubr.msk.f32.mxu1 (!%p194_p9), %vm306_vm0, %v1402_v1  ;;  %vm1423_vm1 = vmpackc.low (!%p194_p9), %vm306_vm0, %vm306_vm0  ;;  %vm678_vm2 = vcmask (!%p194_p9), 130048  }
  0x12   : > { %1233 = vset.pattern.permute.xlu0 (!%p194_p9), %v1315_v3  ;;  %1234 = vset.pattern.permute.xlu1 (!%p194_p9), %v1315_v3  ;;  %s218_s26 = sand.u32 (!%p194_p9), 1, %s1305_s21  }
  0x13   : > { %298 = vperm.xlu0 (!%p194_p9), %1233, %v294_v2   ;;  %s936_s27 = sshll.u32 (!%p194_p9), %s218_s26, 2  ;;  %s859_s12 = scalar_lea.sflag (!%p194_p9), [#allocation4], %s218_s26 }
  0x14   : > { %s220_s7 = scalar_lea.vmem (!%p194_p9), [#allocation3], %s936_s27 }
  0x15   : > { %s873_s8 = sshll.u32 (!%p194_p9), %s220_s7, 4  ;;  %s1576_s8 = int_to_ptr.vmem [resolvable:$true] %s873_s8 }
  0x16   : > { %s1251_s13 = scalar_lea.vmem (!%p194_p9), %s1576_s8, 64 }
  0x17   : > { %303 = vperm.xlu0 (!%p194_p9), %1233, %v295_v4   ;;  %p1252_p11 = scmp.ne.s32.totalorder (!%p194_p9), %s1576_s8, %s1251_s13 }
  0x18   : > { %s223_s11 = scalar_select %p222_p10, %s1397_s6, 127 }
  0x19   : > { %p1253_p12 = pnand %p1252_p11, %p1387_p5 }
  0x1a   : > { %s938_s14 = sshll.u32 %s223_s11, 3  ;;  %s1574_s11 = scalar_lea.hbm %s1621_s5, %s1397_s6 }
  0x1b   : > { %s1419_s17 = scalar_lea.vmem %s1616_s0, %s938_s14  ;;  %p1254_p13 = pneg %p1253_p12 }
  0x1c   : > { %v244_v6 = vld [vmem:[%s1419_s17 + $0x80] sm:$0xff]  ;;  %v245_v7 = vld [vmem:[%s1419_s17 + $0x88] sm:$0xff]  ;;  %v246_v17 = vld [vmem:[%s1419_s17 + $0x90] sm:$0xff]  ;;  %s1318_s14 = smov [#allocation3]  }
  0x1d   : > { %v276_v8 = vld [vmem:[%s1419_s17 + $0x180] sm:$0xff]  ;;  %v1087_v9 = vpack.c.bf16 %v245_v7, %v244_v6  ;;  %v277_v10 = vld [vmem:[%s1419_s17 + $0x188] sm:$0xff]  ;;  %v247_v19 = vld [vmem:[%s1419_s17 + $0x98] sm:$0xff]  ;;  %s1255_s15 = sshll.u32 %s1318_s14, 4  ;;  %s1256_s15 = int_to_ptr.vmem [resolvable:$false] %s1255_s15 }
  0x1e   : > { %v228_v11 = vld [vmem:[%s1419_s17] sm:$0xff]  ;;  %v229_v12 = vld [vmem:[%s1419_s17 + $0x8] sm:$0xff]  ;;  %v1135_v13 = vpack.c.bf16 %v277_v10, %v276_v8  ;;  %v278_v20 = vld [vmem:[%s1419_s17 + $0x190] sm:$0xff]  ;;  %v1093_v22 = vpack.c.bf16 %v247_v19, %v246_v17  ;;  %s1257_s16 = scalar_lea.vmem %s1256_s15, 128  ;;  %p1258_p0 = scmp.lt.s32.totalorder %s1576_s8, %s1256_s15 }
  0x1f   : > { %v1090_v14 = vpack.c.bf16 %v229_v12, %v228_v11  ;;  %v260_v15 = vld [vmem:[%s1419_s17 + $0x100] sm:$0xff]  ;;  %v261_v16 = vld [vmem:[%s1419_s17 + $0x108] sm:$0xff]  ;;  %1089 = vmatprep.subr.msk.bf16.mxu0 %vm1423_vm1, %v1087_v9  ;;  %v279_v21 = vld [vmem:[%s1419_s17 + $0x198] sm:$0xff]  ;;  %p1259_p1 = scmp.lt.s32.totalorder %s1257_s16, %s1251_s13 }
  0x20   : > { %v1138_v18 = vpack.c.bf16 %v261_v16, %v260_v15  ;;  %1137 = vmatprep.subr.msk.bf16.mxu1 %vm1423_vm1, %v1135_v13  ;;  %v1141_v23 = vpack.c.bf16 %v279_v21, %v278_v20  ;;  %v230_v24 = vld [vmem:[%s1419_s17 + $0x10] sm:$0xff]  ;;  %v231_v25 = vld [vmem:[%s1419_s17 + $0x18] sm:$0xff]  ;;  %v248_v28 = vld [vmem:[%s1419_s17 + $0xa0] sm:$0xff] }
  0x21   : > { %1092 = vmatpush3.bf16.xpose.msk.msra.mxu0 %vm1423_vm1, %v1090_v14  ;;  %v262_v26 = vld [vmem:[%s1419_s17 + $0x110] sm:$0xff]  ;;  %v263_v27 = vld [vmem:[%s1419_s17 + $0x118] sm:$0xff]  ;;  %v249_v29 = vld [vmem:[%s1419_s17 + $0xa8] sm:$0xff]  ;;  %v1096_v32 = vpack.c.bf16 %v231_v25, %v230_v24  ;;  %p1260_p2 = por %p1259_p1, %p1258_p0 }
  0x22   : > { %1140 = vmatpush3.bf16.xpose.msk.msra.mxu1 %vm1423_vm1, %v1138_v18  ;;  %1095 = vmatprep.subr.msk.bf16.mxu0 %vm1423_vm1, %v1093_v22  ;;  %v280_v30 = vld [vmem:[%s1419_s17 + $0x1a0] sm:$0xff]  ;;  %v281_v31 = vld [vmem:[%s1419_s17 + $0x1a8] sm:$0xff]  ;;  %v1144_v33 = vpack.c.bf16 %v263_v27, %v262_v26  ;;  %v1099_v34 = vpack.c.bf16 %v249_v29, %v248_v28  ;;  %v250_v40 = vld [vmem:[%s1419_s17 + $0xb0] sm:$0xff] }
  0x23   : > { %1143 = vmatprep.subr.msk.bf16.mxu1 %vm1423_vm1, %v1141_v23  ;;  %v1147_v35 = vpack.c.bf16 %v281_v31, %v280_v30  ;;  %v232_v36 = vld [vmem:[%s1419_s17 + $0x20] sm:$0xff]  ;;  %v233_v37 = vld [vmem:[%s1419_s17 + $0x28] sm:$0xff]  ;;  %v251_v41 = vld [vmem:[%s1419_s17 + $0xb8] sm:$0xff]  ;;  %p1261_p3 = pnand %p1260_p2, %p1254_p13 }
  0x24   : > { %v264_v38 = vld [vmem:[%s1419_s17 + $0x120] sm:$0xff]  ;;  %v265_v39 = vld [vmem:[%s1419_s17 + $0x128] sm:$0xff]  ;;  %v282_v42 = vld [vmem:[%s1419_s17 + $0x1b0] sm:$0xff]  ;;  %v1102_v44 = vpack.c.bf16 %v233_v37, %v232_v36  ;;  %v1105_v46 = vpack.c.bf16 %v251_v41, %v250_v40 }
  0x25   : > { %v283_v43 = vld [vmem:[%s1419_s17 + $0x1b8] sm:$0xff]  ;;  %v1150_v45 = vpack.c.bf16 %v265_v39, %v264_v38  ;;  %v234_v48 = vld [vmem:[%s1419_s17 + $0x30] sm:$0xff]  ;;  %v252_v52 = vld [vmem:[%s1419_s17 + $0xc0] sm:$0xff] }
  0x26   : > { %v1153_v47 = vpack.c.bf16 %v283_v43, %v282_v42  ;;  %v235_v49 = vld [vmem:[%s1419_s17 + $0x38] sm:$0xff]  ;;  %v266_v50 = vld [vmem:[%s1419_s17 + $0x130] sm:$0xff]  ;;  %v253_v53 = vld [vmem:[%s1419_s17 + $0xc8] sm:$0xff] }
  0x27   : > { %v267_v51 = vld [vmem:[%s1419_s17 + $0x138] sm:$0xff]  ;;  %v284_v54 = vld [vmem:[%s1419_s17 + $0x1c0] sm:$0xff]  ;;  %v285_v55 = vld [vmem:[%s1419_s17 + $0x1c8] sm:$0xff]  ;;  %v1108_v56 = vpack.c.bf16 %v235_v49, %v234_v48  ;;  %v1111_v58 = vpack.c.bf16 %v253_v53, %v252_v52 }
  0x28   : > { %v1156_v57 = vpack.c.bf16 %v267_v51, %v266_v50  ;;  %v1159_v59 = vpack.c.bf16 %v285_v55, %v284_v54  ;;  %v236_v60 = vld [vmem:[%s1419_s17 + $0x40] sm:$0xff]  ;;  %v237_v61 = vld [vmem:[%s1419_s17 + $0x48] sm:$0xff]  ;;  %v254_v0 = vld [vmem:[%s1419_s17 + $0xd0] sm:$0xff] }
  0x29   : > { %1098 = vmatpush3.bf16.xpose.msk.msra.mxu0 %vm1423_vm1, %v1096_v32  ;;  %v268_v62 = vld [vmem:[%s1419_s17 + $0x140] sm:$0xff]  ;;  %v269_v63 = vld [vmem:[%s1419_s17 + $0x148] sm:$0xff]  ;;  %v255_v2 = vld [vmem:[%s1419_s17 + $0xd8] sm:$0xff]  ;;  %v1114_v6 = vpack.c.bf16 %v237_v61, %v236_v60 }
  0x2a   : > { %1146 = vmatpush3.bf16.xpose.msk.msra.mxu1 %vm1423_vm1, %v1144_v33  ;;  %1101 = vmatprep.subr.msk.bf16.mxu0 %vm1423_vm1, %v1099_v34  ;;  %v286_v3 = vld [vmem:[%s1419_s17 + $0x1d0] sm:$0xff]  ;;  %v287_v4 = vld [vmem:[%s1419_s17 + $0x1d8] sm:$0xff]  ;;  %v1162_v7 = vpack.c.bf16 %v269_v63, %v268_v62  ;;  %v1117_v8 = vpack.c.bf16 %v255_v2, %v254_v0  ;;  %v256_v14 = vld [vmem:[%s1419_s17 + $0xe0] sm:$0xff] }
  0x2b   : > { %1149 = vmatprep.subr.msk.bf16.mxu1 %vm1423_vm1, %v1147_v35  ;;  %v1165_v9 = vpack.c.bf16 %v287_v4, %v286_v3  ;;  %v238_v10 = vld [vmem:[%s1419_s17 + $0x50] sm:$0xff]  ;;  %v239_v11 = vld [vmem:[%s1419_s17 + $0x58] sm:$0xff]  ;;  %v257_v15 = vld [vmem:[%s1419_s17 + $0xe8] sm:$0xff] }
  0x2c   : > { %v270_v12 = vld [vmem:[%s1419_s17 + $0x150] sm:$0xff]  ;;  %v271_v13 = vld [vmem:[%s1419_s17 + $0x158] sm:$0xff]  ;;  %v288_v16 = vld [vmem:[%s1419_s17 + $0x1e0] sm:$0xff]  ;;  %v1120_v18 = vpack.c.bf16 %v239_v11, %v238_v10  ;;  %v1123_v20 = vpack.c.bf16 %v257_v15, %v256_v14  ;;  %v674_v10 = vlaneseq }
  0x2d   : > { %v289_v17 = vld [vmem:[%s1419_s17 + $0x1e8] sm:$0xff]  ;;  %v1168_v19 = vpack.c.bf16 %v271_v13, %v270_v12  ;;  %v240_v22 = vld [vmem:[%s1419_s17 + $0x60] sm:$0xff]  ;;  %v258_v26 = vld [vmem:[%s1419_s17 + $0xf0] sm:$0xff]  ;;  %v1317_v13 = vmov 1966171168  }
  0x2e   : > { %v1171_v21 = vpack.c.bf16 %v289_v17, %v288_v16  ;;  %v241_v23 = vld [vmem:[%s1419_s17 + $0x68] sm:$0xff]  ;;  %v272_v24 = vld [vmem:[%s1419_s17 + $0x160] sm:$0xff]  ;;  %v259_v27 = vld [vmem:[%s1419_s17 + $0xf8] sm:$0xff]  ;;  %v675_v11 = vshrl.u32 %v674_v10, 7  ;;  %v831_v14 = vunpack.c.l.s4 %v1317_v13  ;;  %vm855_vm3 = vcmp.lt.s32.totalorder %v674_v10, 512 }
  0x2f   : > { %v273_v25 = vld [vmem:[%s1419_s17 + $0x168] sm:$0xff]  ;;  %v290_v28 = vld [vmem:[%s1419_s17 + $0x1f0] sm:$0xff]  ;;  %v291_v29 = vld [vmem:[%s1419_s17 + $0x1f8] sm:$0xff]  ;;  %v1126_v30 = vpack.c.bf16 %v241_v23, %v240_v22  ;;  %v1129_v32 = vpack.c.bf16 %v259_v27, %v258_v26 }
  0x30   : > { %v1174_v31 = vpack.c.bf16 %v273_v25, %v272_v24  ;;  %v1177_v33 = vpack.c.bf16 %v291_v29, %v290_v28  ;;  %v242_v34 = vld [vmem:[%s1419_s17 + $0x70] sm:$0xff]  ;;  %v243_v35 = vld [vmem:[%s1419_s17 + $0x78] sm:$0xff]  ;;  %v293_v40 = vld [vmem:[%s1617_s1 + $0x8] sm:$0xff]  ;;  %v676_v12 = vsub.s32 0, %v675_v11  ;;  %v832_v17 = vunpack.c.0.s8 %v831_v14 }
  0x31   : > { %1104 = vmatpush3.bf16.xpose.msk.msra.mxu0 %vm1423_vm1, %v1102_v44  ;;  %v274_v36 = vld [vmem:[%s1419_s17 + $0x170] sm:$0xff]  ;;  %v275_v37 = vld [vmem:[%s1419_s17 + $0x178] sm:$0xff]  ;;  %v1132_v38 = vpack.c.bf16 %v243_v35, %v242_v34  ;;  %v668_v41 = vld [vmem:[#allocation2] sm:$0x1] }
  0x32   : > { %1152 = vmatpush3.bf16.xpose.msk.msra.mxu1 %vm1423_vm1, %v1150_v45  ;;  %1107 = vmatprep.subr.msk.bf16.mxu0 %vm1423_vm1, %v1105_v46  ;;  %v1180_v39 = vpack.c.bf16 %v275_v37, %v274_v36  ;;  %v835_v22 = vsub.s32 %v832_v17, %v675_v11 }
  0x33   : > { %1155 = vmatprep.subr.msk.bf16.mxu1 %vm1423_vm1, %v1153_v47  ;;  %671 = vperm.xlu1 %1234, %v668_v41  }
  0x39   : > { %1110 = vmatpush3.bf16.xpose.msk.msra.mxu0 %vm1423_vm1, %v1108_v56 }
  0x3a   : > { %1158 = vmatpush3.bf16.xpose.msk.msra.mxu1 %vm1423_vm1, %v1156_v57  ;;  %1113 = vmatprep.subr.msk.bf16.mxu0 %vm1423_vm1, %v1111_v58 }
  0x3b   : > { %1161 = vmatprep.subr.msk.bf16.mxu1 %vm1423_vm1, %v1159_v59 }
  0x41   : > { %1116 = vmatpush3.bf16.xpose.msk.msra.mxu0 %vm1423_vm1, %v1114_v6 }
  0x42   : > { %1164 = vmatpush3.bf16.xpose.msk.msra.mxu1 %vm1423_vm1, %v1162_v7  ;;  %1119 = vmatprep.subr.msk.bf16.mxu0 %vm1423_vm1, %v1117_v8 }
  0x43   : > { %1167 = vmatprep.subr.msk.bf16.mxu1 %vm1423_vm1, %v1165_v9  ;;  %v667_v9 = vld [vmem:[%s1619_s3] sm:$0x1] }
  0x49   : > { %1122 = vmatpush3.bf16.xpose.msk.msra.mxu0 %vm1423_vm1, %v1120_v18 }
  0x4a   : > { %1170 = vmatpush3.bf16.xpose.msk.msra.mxu1 %vm1423_vm1, %v1168_v19  ;;  %1125 = vmatprep.subr.msk.bf16.mxu0 %vm1423_vm1, %v1123_v20 }
  0x4b   : > { %1173 = vmatprep.subr.msk.bf16.mxu1 %vm1423_vm1, %v1171_v21 }
  0x51   : > { %1128 = vmatpush3.bf16.xpose.msk.msra.mxu0 %vm1423_vm1, %v1126_v30 }
  0x52   : > { %1176 = vmatpush3.bf16.xpose.msk.msra.mxu1 %vm1423_vm1, %v1174_v31  ;;  %1131 = vmatprep.subr.msk.bf16.mxu0 %vm1423_vm1, %v1129_v32 }
  0x53   : > { %1179 = vmatprep.subr.msk.bf16.mxu1 %vm1423_vm1, %v1177_v33 }
  0x59   : > { %1134 = vmatpush3.bf16.xpose.msk.msra.mxu0 %vm1423_vm1, %v1132_v38 }
  0x5a   : > { %1182 = vmatpush3.bf16.xpose.msk.msra.mxu1 %vm1423_vm1, %v1180_v39 }
  0x60   : > { %1048 = vmatmul.mubr.msk.f32.vlgmr.msra.gmra.mrb[0].mxu0 %vm306_vm0, %v1402_v1 }
  0x61   : > { %1084 = vmatmul.mubr.msk.f32.vlgmr.msra.gmra.mrb[0].mxu1 %vm306_vm0, %v1402_v1  ;;  %1049 = vmatprep.mubr.msk.f32.mxu0 %vm306_vm0, %v293_v40 }
  0x62   : > { %1085 = vmatprep.mubr.msk.f32.mxu1 %vm306_vm0, %v293_v40 }
  0x64   : > { %1050 = vmatmul.mubr.msk.f32.gmra.mrb[2].mxu0 %vm306_vm0, %v293_v40 }
  0x65   : > { %1086 = vmatmul.mubr.msk.f32.gmra.mrb[2].mxu1 %vm306_vm0, %v293_v40  ;;  %746 = vmatprep.mubr.f32.mxu0 %v1316_v5 }
  0x66   : > { %817 = vmatprep.mubr.f32.mxu1 %v1316_v5 }
  0x92   : > { %v299_v42 = vpop.permute.xlu0 %298 }
  0x96   : > { %v304_v50 = vpop.permute.xlu0 %303 }
  0xb2   : > { %v672_v15 = vpop.permute.xlu1 %671 }
  0xb3   : > { %v677_v16 = vrot.slane %v672_v15, %v676_v12 }
 0x133   : > { %v571_v43 = vpop.f32.mrb[0].mxu0 }
 0x134   : > { %v572_v44 = vadd.f32 %v571_v43, %v299_v42  ;;  %v648_v45 = vpop.f32.mrb[0].mxu1  ;;  %v573_v46 = vpop.f32.mrb[1].mxu0 }
 0x135   : > { %v649_v47 = vadd.f32 %v648_v45, %v299_v42  ;;  %v574_v1 = vadd.f32 %v573_v46, %v299_v42  ;;  %v650_v48 = vpop.f32.mrb[1].mxu1 }
 0x136   : > { %1235 = vtanh.f32 %v572_v44  ;;  %v651_v49 = vadd.f32 %v650_v48, %v299_v42 }
 0x137   : > { %1237 = vtanh.f32 %v649_v47  ;;  %v577_v51 = vpop.f32.mrb[2].mxu0 }
 0x138   : > { %1239 = vtanh.f32 %v574_v1  ;;  %v578_v52 = vadd.f32 %v577_v51, %v304_v50  ;;  %v654_v53 = vpop.f32.mrb[2].mxu1  ;;  %v579_v54 = vpop.f32.mrb[3].mxu0 }
 0x139   : > { %1241 = vtanh.f32 %v651_v49  ;;  %v655_v55 = vadd.f32 %v654_v53, %v304_v50  ;;  %v580_v56 = vadd.f32 %v579_v54, %v304_v50  ;;  %v656_v57 = vpop.f32.mrb[3].mxu1 }
 0x13a   : > { %1243 = vtanh.f32 %v578_v52  ;;  %v657_v58 = vadd.f32 %v656_v57, %v304_v50 }
 0x13b   : > { %1245 = vtanh.f32 %v655_v55 }
 0x13c   : > { %1247 = vtanh.f32 %v580_v56 }
 0x13d   : > { %1249 = vtanh.f32 %v657_v58 }
 0x140   : > { %v1236_v59 = vpop.eup %1235 }
 0x141   : > { %v1238_v60 = vpop.eup %1237 }
 0x142   : > { %v1240_v61 = vpop.eup %1239 }
 0x143   : > { %v1242_v62 = vpop.eup %1241 }
 0x144   : > { %v1244_v63 = vpop.eup %1243 }
 0x145   : > { %v1246_v0 = vpop.eup %1245  ;;  %v1185_v2 = vpack.c.bf16 %v1244_v63, %v1236_v59 }
 0x146   : > { %v1248_v3 = vpop.eup %1247  ;;  %v1189_v4 = vpack.c.bf16 %v1246_v0, %v1238_v60 }
 0x147   : > { %v1250_v6 = vpop.eup %1249  ;;  %v1183_v7 = vpack.c.bf16 %v1248_v3, %v1240_v61 }
 0x148   : > { %v1187_v8 = vpack.c.bf16 %v1250_v6, %v1242_v62 }
 0x149   : > { %1184 = vmatprep.subr.bf16.mxu0 %v1183_v7 }
 0x14a   : > { %1188 = vmatprep.subr.bf16.mxu1 %v1187_v8  ;;  %1186 = vmatpush1.bf16.msra.mxu0 %v1185_v2 }
 0x14b   : > { %1190 = vmatpush1.bf16.msra.mxu1 %v1189_v4 }
 0x14d   : > { %1007 = vmatmul.mubr.msk.f32.vlgmr.msra.gmra.mrb[4].mxu0 %vm678_vm2, %v667_v9 }
 0x14e   : > { %1008 = vmatmul.mubr.msk.f32.vlgmr.msra.gmra.mrb[4].mxu1 %vm678_vm2, %v667_v9 }
 0x220   : > { %v748_v18 = vpop.f32.mrb[4].mxu0 }
 0x221   : > { %v749_v19 = vadd.f32 %v748_v18, %v677_v16  ;;  %v819_v20 = vpop.f32.mrb[4].mxu1  ;;  %v750_v21 = vpop.f32.mrb[5].mxu0 }
 0x222   : > { %v820_v23 = vadd.f32 %v819_v20, %v677_v16  ;;  %v751_v24 = vadd.f32 %v750_v21, %v677_v16  ;;  %v821_v25 = vpop.f32.mrb[5].mxu1 }
 0x223   : > { %v822_v26 = vadd.f32 %v821_v25, %v677_v16 }
 0x224   : > { %v828_v27 = vcombine.low %v749_v19, %v751_v24 }
 0x225   : > { %v829_v28 = vcombine.low %v820_v23, %v822_v26 }
 0x226   : > { %v836_v29 = vrot.slane %v828_v27, %v835_v22 }
 0x227   : > { %v843_v30 = vrot.slane %v829_v28, %v835_v22 }
 0x229   : > { %v844_v31 = vcombine.low %v836_v29, %v843_v30 }
 0x22b   : > { %v851_v32 = vrot.slane %v844_v31, %v835_v22 }
 0x22d   : > { %857 = vst.msk [vmem:[%s220_s7] sm:$0xf] %vm855_vm3, %v851_v32 }
 0x22e   : > { %1264 = shalt.err (!%p1261_p3)
}
 0x22f   : > { %s1265_s6 = scalar_lea.hbm %s1574_s11, 64  ;;  %s1269_s19 = scalar_lea.hbm %s1621_s5, 128 }
 0x230   : > { %p1266_p4 = scmp.ne.s32.totalorder %s1574_s11, %s1265_s6  ;;  %p1270_p9 = scmp.lt.u32.totalorder %s1574_s11, %s1621_s5 }
 0x231   : > { %p1271_p10 = scmp.lt.u32.totalorder %s1269_s19, %s1265_s6  ;;  %p1273_p12 = scmp.lt.u32.totalorder %s1265_s6, %s1574_s11 }
 0x232   : > { %p1267_p7 = pnand %p1266_p4, %p1387_p5 }
 0x233   : > { %p1272_p11 = por %p1271_p10, %p1270_p9 }
 0x234   : > { %p1268_p8 = pneg %p1267_p7 }
 0x235   : > { %p1274_p13 = por %p1273_p12, %p1272_p11 }
 0x237   : > { %p1275_p0 = pnand %p1274_p13, %p1268_p8 }
 0x239   : > { %1278 = shalt.err (!%p1275_p0)
}
 0x23a   : > { %1191 = dma.vmem_to_hbm [thread:$0]  (%p1387_p5), %s1576_s8, 64, %s1574_s11, %s859_s12  }
 0x23b PF: > { %p1197_p1 = scmp.ge.s32.totalorder %s1313_s23, 2  ;;  %s885_s26 = sand.u32 1, %s1301_s20  }
 0x23c   : > { %s886_s27 = scalar_lea.sflag [#allocation4], %s885_s26 }
 0x23d   : > { %p1194_p2 = pnand %p1197_p1, %p1391_p6 }
 0x23f   : > { %1296 = dma.done.wait (!%p1194_p2), %s886_s27, 64  }
 0x240   : > { %1298 = vsyncadd (!%p1194_p2), %s886_s27, 4294967232  ;;  %p17_p3 = scmp.ge.s32.totalorder %s1375_s25, 4   ;;  %s1626_s20 = smov %s1305_s21 }
 0x241   : > { %s1627_s21 = smov %s1309_s22  ;;  %s1628_s22 = smov %s1385_s28 }
 0x242   : > { %s1629_s23 = smov %s1375_s25  ;;  %19 = sbr.rel (!%p17_p3) target bundleno = 6 (0x6), region = 75 }
 0x249   :  { %891 = vsyncpa [#allocation4], 1 }
 0x24a   :  { %893 = vsyncpa [#allocation4 + $0x1], 1 }

</bundles_post_ra>
